<compile_context>
chip_gen: v5e
topology: v5e:2x2
jax: 0.10.0
libtpu: 0.0.40
codegen_flags: <defaults>
</compile_context>

<pallas_src>
import functools

import jax
import jax.numpy as jnp
from jax.experimental import pallas as pl
from jax.experimental.pallas import tpu as pltpu


# ---------------------------------------------------------------------------
# Path 1: direct HBM -> HBM strided DMA (crop folded into the DMA source).
# ---------------------------------------------------------------------------
def _hbm_crop_kernel(x_hbm, o_hbm, sems, *, crop_start, target, chunk_rows,
                     num_rows, nsub):
    i = pl.program_id(0)
    # Clamp the last chunk so every chunk copies exactly `chunk_rows` rows.
    # Overlapping rows are rewritten with identical data -> benign.
    row0 = jnp.minimum(i * chunk_rows, num_rows - chunk_rows)
    base = chunk_rows // nsub
    copies = []
    off = 0
    for s in range(nsub):
        rows_s = base if s < nsub - 1 else chunk_rows - base * (nsub - 1)
        cp = pltpu.make_async_copy(
            x_hbm.at[pl.ds(row0 + off, rows_s), pl.ds(crop_start, target)],
            o_hbm.at[pl.ds(row0 + off, rows_s), :],
            sems.at[s],
        )
        cp.start()                      # keep several DMAs in flight per step
        copies.append(cp)
        off += rows_s
    for cp in copies:
        cp.wait()


def _crop_hbm_to_hbm(x2d, crop_start, target):
    num_rows, _ = x2d.shape
    itemsize = x2d.dtype.itemsize
    out_bytes = num_rows * target * itemsize
    # A few large chunks: >= 2 so both v7x TensorCores get work, <= 8 so the
    # (tiny) per-step overhead stays negligible.
    n_chunks = min(num_rows, 8, max(1, pl.cdiv(out_bytes, 4 << 20)))
    if num_rows >= 2:
        n_chunks = max(n_chunks, 2)
    chunk_rows = pl.cdiv(num_rows, n_chunks)
    n_chunks = pl.cdiv(num_rows, chunk_rows)
    nsub = min(4, chunk_rows)           # concurrent DMAs per grid step

    kernel = functools.partial(
        _hbm_crop_kernel,
        crop_start=crop_start, target=target, chunk_rows=chunk_rows,
        num_rows=num_rows, nsub=nsub)

    return pl.pallas_call(
        kernel,
        out_shape=jax.ShapeDtypeStruct((num_rows, target), x2d.dtype),
        grid_spec=pltpu.PrefetchScalarGridSpec(
            num_scalar_prefetch=0,
            grid=(n_chunks,),
            in_specs=[pl.BlockSpec(memory_space=pl.ANY)],
            out_specs=pl.BlockSpec(memory_space=pl.ANY),
            scratch_shapes=[pltpu.SemaphoreType.DMA((nsub,))]),
        compiler_params=pltpu.CompilerParams(
            dimension_semantics=("parallel",)),
        cost_estimate=pl.CostEstimate(
            flops=0, transcendentals=0, bytes_accessed=2 * out_bytes),
    )(x2d)


# ---------------------------------------------------------------------------
# Path 2: auto-pipelined full-row read + in-VMEM lane slice.
# ---------------------------------------------------------------------------
def _vmem_crop_kernel(x_ref, o_ref, *, crop_start, target):
    # Full rows were DMA'd in by the auto-pipeline; the crop is a static lane
    # slice (cheap XLU work on an otherwise memory-bound kernel).
    o_ref[...] = x_ref[:, crop_start:crop_start + target]


def _vmem_budget_bytes():
    """Per-input-block budget, generation aware (big on v5e/v6e, safe on v7x)."""
    try:
        cap = pltpu.get_tpu_info().vmem_capacity_bytes
    except Exception:
        cap = 64 << 20                   # conservative (v7x-sized) default
    return int(min(8 << 20, max(2 << 20, cap // 16)))


def _pick_rows_per_block(num_rows, row_bytes, budget_bytes):
    """Multiple-of-8 divisor of num_rows whose input block fits the budget.

    Returns num_rows (single full-extent block) for small odd-row inputs, and
    None for large odd-row inputs (caller splits bulk + tail instead of
    allocating a whole-array block that could blow v7x's VMEM).
    """
    if num_rows % 8 == 0 and num_rows >= 8:
        cap = max(8, budget_bytes // max(1, row_bytes))
        cap -= cap % 8
        cap = min(cap, num_rows)
        if num_rows >= 16:               # leave >= 2 grid steps for megacore
            cap = min(cap, max(8, (num_rows // 2) // 8 * 8))
        best = 8
        for r in range(cap, 7, -8):
            if num_rows % r == 0:
                best = r
                break
        return best
    if num_rows * row_bytes <= budget_bytes:
        return num_rows                  # small odd-row case: one full block
    return None


def _crop_pipelined_blocked(x2d, crop_start, target, rows_per_block):
    num_rows, length = x2d.shape
    itemsize = x2d.dtype.itemsize
    in_block = rows_per_block * length * itemsize
    out_block = rows_per_block * target * itemsize
    # Double-buffered input + output, plus headroom; stays well under v7x's
    # 64 MiB physical VMEM because the block budget is capped at 8 MiB.
    vmem_limit = min(2 * (in_block + out_block) + (2 << 20), 48 << 20)

    kernel = functools.partial(_vmem_crop_kernel,
                               crop_start=crop_start, target=target)
    return pl.pallas_call(
        kernel,
        out_shape=jax.ShapeDtypeStruct((num_rows, target), x2d.dtype),
        grid_spec=pltpu.PrefetchScalarGridSpec(
            num_scalar_prefetch=0,
            grid=(num_rows // rows_per_block,),
            in_specs=[pl.BlockSpec((rows_per_block, length),
                                   lambda i: (i, 0))],
            out_specs=pl.BlockSpec((rows_per_block, target),
                                   lambda i: (i, 0))),
        compiler_params=pltpu.CompilerParams(
            dimension_semantics=("parallel",),
            vmem_limit_bytes=vmem_limit),
        cost_estimate=pl.CostEstimate(
            flops=0, transcendentals=0,
            bytes_accessed=num_rows * (length + target) * itemsize),
    )(x2d)


def _crop_pipelined(x2d, crop_start, target):
    num_rows, length = x2d.shape
    itemsize = x2d.dtype.itemsize
    budget = _vmem_budget_bytes()
    rpb = _pick_rows_per_block(num_rows, length * itemsize, budget)
    if rpb is not None:
        return _crop_pipelined_blocked(x2d, crop_start, target, rpb)
    # Large input whose row count is not a multiple of 8: crop the 8-aligned
    # bulk with proper blocks and the (<8 row) tail with its own tiny call.
    bulk = num_rows - (num_rows % 8)
    if bulk == 0:                        # pathological; single block anyway
        return _crop_pipelined_blocked(x2d, crop_start, target, num_rows)
    bulk_rpb = _pick_rows_per_block(bulk, length * itemsize, budget)
    parts = [
        _crop_pipelined_blocked(x2d[:bulk], crop_start, target, bulk_rpb),
        _crop_pipelined_blocked(x2d[bulk:], crop_start, target,
                                num_rows - bulk),
    ]
    return jnp.concatenate(parts, axis=0)


# ---------------------------------------------------------------------------
# Public wrapper: PyTorch CenterCrop.forward semantics for (N, C, L).
# ---------------------------------------------------------------------------
def center_crop(x: jax.Array, target_shape: int) -> jax.Array:
    n, c, length = x.shape
    if length == target_shape:
        return x
    if target_shape > length:
        raise ValueError(
            f"target_shape ({target_shape}) must be <= input length ({length})")

    diff = length - target_shape
    crop_start = diff // 2               # crop_end implied by the slice size

    num_rows = n * c
    x2d = x.reshape(num_rows, length)    # layout-preserving bitcast reshape

    narrow = target_shape * x.dtype.itemsize < 512   # < 128 f32 lanes kept
    if narrow:
        out2d = _crop_pipelined(x2d, crop_start, target_shape)
    else:
        try:
            out2d = _crop_hbm_to_hbm(x2d, crop_start, target_shape)
        except Exception:
            # Mosaic rejected the HBM->HBM strided DMA for this shape/layout;
            # fall back to the fully pipelined VMEM path.
            out2d = _crop_pipelined(x2d, crop_start, target_shape)
    return out2d.reshape(n, c, target_shape)


if __name__ == "__main__":
    key = jax.random.PRNGKey(0)

    def _ref_crop(a, t):
        d = a.shape[-1] - t
        cs = d // 2
        ce = d - cs
        return a[:, :, cs:a.shape[-1] - ce]

    # 1) Small shape from the module: (batch=2, channels=4, length=16) -> 8.
    x = jax.random.normal(key, (2, 4, 16), dtype=jnp.float32)
    target = 8
    out = jax.block_until_ready(center_crop(x, target))
    assert out.shape == (2, 4, target), out.shape
    assert out.dtype == x.dtype
    assert jnp.array_equal(out, _ref_crop(x, target)), "mismatch (narrow path)"

    # 2) Identity path (shape == target_shape) returns the input unchanged.
    same = center_crop(x, x.shape[-1])
    assert same is x

    # 3) Asymmetric crop (crop_start != crop_end).
    x2 = jax.random.normal(jax.random.PRNGKey(1), (2, 4, 13), dtype=jnp.float32)
    out2 = jax.block_until_ready(center_crop(x2, 6))
    assert jnp.array_equal(out2, _ref_crop(x2, 6)), "mismatch (odd crop)"

    # 4) Wide window -> exercises the HBM->HBM DMA path (with safe fallback).
    x3 = jax.random.normal(jax.random.PRNGKey(2), (2, 8, 1024),
                           dtype=jnp.float32)
    out3 = jax.block_until_ready(center_crop(x3, 768))
    assert out3.shape == (2, 8, 768)
    assert jnp.array_equal(out3, _ref_crop(x3, 768)), "mismatch (wide path)"

    # 5) Odd row count (N*C not a multiple of 8).
    x4 = jax.random.normal(jax.random.PRNGKey(3), (1, 3, 32), dtype=jnp.float32)
    out4 = jax.block_until_ready(center_crop(x4, 16))
    assert jnp.array_equal(out4, _ref_crop(x4, 16)), "mismatch (odd rows)"

    print("KERNEL_OK")
</pallas_src>

<mosaic_0001>
module attributes {stable_mosaic.version = 11 : i64} {
  func.func @_vmem_crop_kernel(%arg0: i32, %arg1: memref<8x16xf32, #tpu.memory_space<vmem>>, %arg2: memref<8x8xf32, #tpu.memory_space<vmem>>) attributes {dimension_semantics = [#tpu.dimension_semantics<parallel>], iteration_bounds = array<i64: 1>, scalar_prefetch = 0 : i64, scratch_operands = 0 : i64, tpu.core_type = #tpu.core_type<tc>, window_params = [{transform_indices = @transform_0, window_bounds = array<i64: 8, 16>}, {transform_indices = @transform_1, window_bounds = array<i64: 8, 8>}]} {
    %c0 = arith.constant 0 : index
    %c4 = arith.constant 4 : index
    %0 = vector.load %arg1[%c0, %c4] : memref<8x16xf32, #tpu.memory_space<vmem>>, vector<8x8xf32>
    %c0_0 = arith.constant 0 : index
    %c0_1 = arith.constant 0 : index
    %1 = vector.load %arg2[%c0_0, %c0_1] : memref<8x8xf32, #tpu.memory_space<vmem>>, vector<8x8xf32>
    tpu.vector_store %arg2[%c0_0, %c0_1], %0 {strides = array<i32>} : memref<8x8xf32, #tpu.memory_space<vmem>>, vector<8x8xf32>,
    return
  }
  func.func @transform_0(%arg0: i32) -> (i32, i32) {
    %c0_i32 = arith.constant 0 : i32
    %c0_i32_0 = arith.constant 0 : i32
    return %arg0, %c0_i32 : i32, i32
  }
  func.func @transform_1(%arg0: i32) -> (i32, i32) {
    %c0_i32 = arith.constant 0 : i32
    %c0_i32_0 = arith.constant 0 : i32
    return %arg0, %c0_i32 : i32, i32
  }
}

</mosaic_0001>

<bundles_post_ra>
// kernel: tpu_custom_call.1
= control target key start
LH: loop header
LB: loop body
LE: loop exit
PB: predicated region body
PF: predicated region fallthrough
CT: control target
= control target key end

     0   :  { %6 = vsyncpa [#allocation3], 0  ;;  %s121_s0 = inlined_call_operand.hbm [shape: f32[8,16], index: 0, kind: input, shape index: {}]   ;;  %s122_s1 = inlined_call_operand.hbm [shape: f32[8,8], index: 1, kind: output, shape index: {}]  }
   0x1   :  { %7 = vsyncpa [#allocation4], 0  ;;  %s13_s8 = sshll.u32 %s121_s0, 4  ;;  %s102_s9 = smov [#allocation2]   ;;  %s14_s8 = int_to_ptr.hbm [resolvable:$true] %s13_s8 }
   0x2   :  { %s15_s10 = sshll.u32 %s102_s9, 4  ;;  %s16_s10 = int_to_ptr.vmem [resolvable:$true] %s15_s10 }
   0x3   :  { %18 = dma.hbm_to_vmem [thread:$0]  %s14_s8, 128, %s16_s10, [#allocation3]  }
   0x4   :  { %98 = dma.done.wait [#allocation3], 128  }
   0x5   :  { %99 = vsyncadd [#allocation3], 4294967168  ;;  %v23_v0 = vld [vmem:[#allocation2] sm:$0xff]  ;;  %s103_s11 = smov 124   ;;  %s104_s12 = smov [#allocation5]   ;;  %vm28_vm0 = vcmask 64512  }
   0x6   :  { %25 = vrot.lane.b32.xlu0 %v23_v0, %s103_s11  ;;  %s35_s13 = sshll.u32 %s104_s12, 4  ;;  %s37_s16 = sshll.u32 %s122_s1, 4  ;;  %s36_s13 = int_to_ptr.vmem [resolvable:$true] %s35_s13  ;;  %s38_s16 = int_to_ptr.hbm [resolvable:$true] %s37_s16 }
  0x78   :  { %v26_v1 = vpop.permute.xlu0 %25 }
  0x79   :  { %29 = vst.msk [vmem:[#allocation5] sm:$0xff] %vm28_vm0, %v26_v1 }
  0x7a   :  { %40 = dma.vmem_to_hbm [thread:$0]  %s36_s13, 128, %s38_s16, [#allocation4]  }
  0x7b   :  { %100 = dma.done.wait [#allocation4], 128  }
  0x7c   :  { %101 = vsyncadd [#allocation4], 4294967168 }
  0x7d   :  { %45 = vsyncpa [#allocation3], 1 }
  0x7e   :  { %46 = vsyncpa [#allocation4], 1 }

</bundles_post_ra>
